<compile_context>
chip_gen: v7x
topology: tpu7x:2x2x1
jax: 0.10.0
libtpu: 0.0.40
codegen_flags: <defaults>
</compile_context>

<pallas_src>
import jax
import jax.numpy as jnp
from jax import lax
from jax.experimental import pallas as pl
from jax.experimental.pallas import tpu as pltpu


def _round_up(x, m):
    return (x + m - 1) // m * m


def encoder_gru_kernel(tok_ref,         # SMEM  (T,) int32   (scalar prefetch)
                       emb_hbm,         # HBM   (V, Hp) f32  (memory_space=pl.ANY)
                       h0_ref,          # VMEM  (1, Hp) f32  (initial hidden)
                       wih_ref,         # VMEM  (Hp, 3Hp) f32 (resident)
                       whh_ref,         # VMEM  (Hp, 3Hp) f32 (resident)
                       b_ref,           # VMEM  (2, 3Hp) f32  (row0: gi bias, row1: gh bias)
                       out_ref,         # VMEM  (T, Hp) f32   (resident; row t written per step)
                       x_buf,           # VMEM  (2, 1, Hp) f32 (embedding-row double buffer)
                       h_scr,           # VMEM  (1, Hp) f32    (hidden carry across steps)
                       sem):            # DMA semaphores (2,)
    t = pl.program_id(0)
    num_steps = pl.num_programs(0)
    Hp = h_scr.shape[-1]
    slot = t % 2

    def start_row_fetch(step, s):
        tok = tok_ref[step]
        pltpu.make_async_copy(emb_hbm.at[pl.ds(tok, 1), :], x_buf.at[s],
                              sem.at[s]).start()

    @pl.when(t == 0)
    def _():
        h_scr[...] = h0_ref[...]
        start_row_fetch(0, 0)

    # Wait for the current token's embedding row (issued at step t-1, or above).
    pltpu.make_async_copy(emb_hbm.at[pl.ds(0, 1), :], x_buf.at[slot],
                          sem.at[slot]).wait()

    # Prefetch the next token's row while this step computes.
    @pl.when(t + 1 < num_steps)
    def _():
        start_row_fetch(t + 1, 1 - slot)

    x = x_buf[slot]                    # (1, Hp)
    h = h_scr[...]                     # (1, Hp)

    # Fused gate projections on the MXU: (1, Hp) @ (Hp, 3Hp) -> (1, 3Hp).
    gi = jnp.dot(x, wih_ref[...], preferred_element_type=jnp.float32) \
        + b_ref[pl.ds(0, 1), :]
    gh = jnp.dot(h, whh_ref[...], preferred_element_type=jnp.float32) \
        + b_ref[pl.ds(1, 1), :]

    # Gate slices are 128-lane aligned (each gate occupies one Hp-wide slot).
    r = jax.nn.sigmoid(gi[:, 0:Hp] + gh[:, 0:Hp])
    z = jax.nn.sigmoid(gi[:, Hp:2 * Hp] + gh[:, Hp:2 * Hp])
    n = jnp.tanh(gi[:, 2 * Hp:3 * Hp] + r * gh[:, 2 * Hp:3 * Hp])
    h_new = (1.0 - z) * n + z * h      # padded lanes stay 0 (see wrapper comments)

    h_scr[...] = h_new
    out_ref[pl.ds(t, 1), :] = h_new


def prepare_padded_params(params):
    """One-time layout prep: pad H -> Hp=round_up(H,128), fold r/z biases."""
    emb, wihT, whhT, bih, bhh = (params["emb"], params["wihT"], params["whhT"],
                                 params["bih"], params["bhh"])
    V, H = emb.shape
    Hp = _round_up(H, 128)
    f32 = jnp.float32

    emb_p = jnp.zeros((V, Hp), f32).at[:, :H].set(emb.astype(f32))

    def pad_w(w):                      # (H, 3H) -> (Hp, 3Hp), gate g at [g*Hp, g*Hp+H)
        out = jnp.zeros((Hp, 3 * Hp), f32)
        for g in range(3):
            out = out.at[:H, g * Hp:g * Hp + H].set(w[:, g * H:(g + 1) * H])
        return out

    wih_p = pad_w(wihT.astype(f32))
    whh_p = pad_w(whhT.astype(f32))

    # Row 0 (added to gi): [b_ir+b_hr, b_iz+b_hz, b_in]; Row 1 (added to gh): [0, 0, b_hn].
    b_i = jnp.zeros((3 * Hp,), f32)
    b_i = b_i.at[0 * Hp:0 * Hp + H].set(bih[0:H] + bhh[0:H])
    b_i = b_i.at[1 * Hp:1 * Hp + H].set(bih[H:2 * H] + bhh[H:2 * H])
    b_i = b_i.at[2 * Hp:2 * Hp + H].set(bih[2 * H:3 * H])
    b_h = jnp.zeros((3 * Hp,), f32).at[2 * Hp:2 * Hp + H].set(bhh[2 * H:3 * H])
    bias = jnp.stack([b_i, b_h], axis=0)            # (2, 3Hp)

    return {"emb_p": emb_p, "wih_p": wih_p, "whh_p": whh_p, "bias": bias,
            "V": V, "H": H, "Hp": Hp}


def encoder_rnn_forward(tokens, hidden0, padded):
    """Run the EncoderRNN forward over a whole token sequence in one kernel.

    tokens:  int32 (T,)      hidden0: f32 (1, 1, H)
    Returns (outputs, hidden): outputs (T, 1, 1, H) — the per-token GRU output
    (== hidden state after that token); hidden (1, 1, H) — final hidden state.
    """
    emb_p, wih_p, whh_p, bias = (padded["emb_p"], padded["wih_p"],
                                 padded["whh_p"], padded["bias"])
    V, H, Hp = padded["V"], padded["H"], padded["Hp"]
    T = tokens.shape[0]

    tokens = jnp.clip(tokens.astype(jnp.int32), 0, V - 1)   # bounds safety
    h0 = jnp.zeros((1, Hp), jnp.float32).at[:, :H].set(hidden0.reshape(1, H))

    out = pl.pallas_call(
        encoder_gru_kernel,
        out_shape=jax.ShapeDtypeStruct((T, Hp), jnp.float32),
        grid_spec=pltpu.PrefetchScalarGridSpec(
            num_scalar_prefetch=1,                      # token ids -> SMEM
            grid=(T,),
            in_specs=[
                pl.BlockSpec(memory_space=pl.ANY),              # embedding table stays in HBM
                pl.BlockSpec((1, Hp), lambda t, tok: (0, 0)),   # initial hidden
                pl.BlockSpec((Hp, 3 * Hp), lambda t, tok: (0, 0)),  # W_ih^T (resident)
                pl.BlockSpec((Hp, 3 * Hp), lambda t, tok: (0, 0)),  # W_hh^T (resident)
                pl.BlockSpec((2, 3 * Hp), lambda t, tok: (0, 0)),   # folded biases
            ],
            out_specs=pl.BlockSpec((T, Hp), lambda t, tok: (0, 0)),  # resident output slab
            scratch_shapes=[
                pltpu.VMEM((2, 1, Hp), jnp.float32),    # embedding-row double buffer
                pltpu.VMEM((1, Hp), jnp.float32),       # hidden carry
                pltpu.SemaphoreType.DMA((2,)),
            ],
        ),
        compiler_params=pltpu.CompilerParams(
            dimension_semantics=("arbitrary",),         # time recurrence is sequential
        ),
    )(tokens, emb_p, h0, wih_p, whh_p, bias)

    outputs = out[:, :H].reshape(T, 1, 1, H)            # per-step (1,1,H) outputs
    hidden = out[T - 1, :H].reshape(1, 1, H)            # final hidden (== last output)
    return outputs, hidden


def reference_forward(tokens, hidden0, params):
    """Pure-JAX reference: the PyTorch GRU step applied token by token."""
    emb, wihT, whhT, bih, bhh = (params["emb"], params["wihT"], params["whhT"],
                                 params["bih"], params["bhh"])
    H = emb.shape[1]

    def step(h, tok):
        x = emb[tok][None, :]
        gi = x @ wihT + bih[None, :]
        gh = h @ whhT + bhh[None, :]
        r = jax.nn.sigmoid(gi[:, :H] + gh[:, :H])
        z = jax.nn.sigmoid(gi[:, H:2 * H] + gh[:, H:2 * H])
        n = jnp.tanh(gi[:, 2 * H:] + r * gh[:, 2 * H:])
        h_new = (1.0 - z) * n + z * h
        return h_new, h_new

    h_final, outs = lax.scan(step, hidden0.reshape(1, H), tokens)
    T = tokens.shape[0]
    return outs.reshape(T, 1, 1, H), h_final.reshape(1, 1, H)


if __name__ == "__main__":
    INPUT_SIZE = 16   # vocab size
    HIDDEN = 32
    SEQ = 8

    key = jax.random.PRNGKey(0)
    k_emb, k_wih, k_whh, k_bih, k_bhh, k_h, k_tok = jax.random.split(key, 7)
    bound = 1.0 / jnp.sqrt(HIDDEN)

    params = {
        # nn.Embedding default init ~ N(0, 1)
        "emb":  jax.random.normal(k_emb, (INPUT_SIZE, HIDDEN), jnp.float32),
        # nn.GRU weights ~ U(-1/sqrt(H), 1/sqrt(H)); stored transposed (H, 3H), gate order r,z,n
        "wihT": jax.random.uniform(k_wih, (HIDDEN, 3 * HIDDEN), jnp.float32, -bound, bound),
        "whhT": jax.random.uniform(k_whh, (HIDDEN, 3 * HIDDEN), jnp.float32, -bound, bound),
        "bih":  jax.random.uniform(k_bih, (3 * HIDDEN,), jnp.float32, -bound, bound),
        "bhh":  jax.random.uniform(k_bhh, (3 * HIDDEN,), jnp.float32, -bound, bound),
    }

    tokens = jax.random.randint(k_tok, (SEQ,), 0, INPUT_SIZE, dtype=jnp.int32)
    hidden0 = jax.random.normal(k_h, (1, 1, HIDDEN), jnp.float32)   # initHidden()-like

    padded = prepare_padded_params(params)       # one-time weight layout prep
    outs, hid = encoder_rnn_forward(tokens, hidden0, padded)
    outs = jax.block_until_ready(outs)
    hid = jax.block_until_ready(hid)

    outs_ref, hid_ref = reference_forward(tokens, hidden0, params)
    assert outs.shape == (SEQ, 1, 1, HIDDEN) and hid.shape == (1, 1, HIDDEN)
    assert jnp.allclose(outs, outs_ref, atol=1e-4), "per-step output mismatch vs reference"
    assert jnp.allclose(hid, hid_ref, atol=1e-4), "final hidden mismatch vs reference"

    # TODO(synk): for batched inference (B>1), shard the batch axis across the
    # two v7x TensorCores via a parallel leading grid axis.
    print("KERNEL_OK")
</pallas_src>

<mosaic_0001>
module attributes {stable_mosaic.version = 11 : i64} {
  func.func @encoder_gru_kernel(%arg0: i32, %arg1: memref<8xi32, #tpu.memory_space<smem>>, %arg2: memref<16x128xf32, #tpu.memory_space<any>>, %arg3: memref<1x128xf32, #tpu.memory_space<vmem>>, %arg4: memref<128x384xf32, #tpu.memory_space<vmem>>, %arg5: memref<128x384xf32, #tpu.memory_space<vmem>>, %arg6: memref<2x384xf32, #tpu.memory_space<vmem>>, %arg7: memref<8x128xf32, #tpu.memory_space<vmem>>, %arg8: memref<2x1x128xf32, #tpu.memory_space<vmem>>, %arg9: memref<1x128xf32, #tpu.memory_space<vmem>>, %arg10: memref<2x!tpu.dma_semaphore, #tpu.memory_space<semaphore_mem>>) attributes {dimension_semantics = [#tpu.dimension_semantics<arbitrary>], iteration_bounds = array<i64: 8>, scalar_prefetch = 1 : i64, scratch_operands = 3 : i64, tpu.core_type = #tpu.core_type<tc>, window_params = [{}, {pipeline_mode = #tpu.pipeline_mode<synchronous>, transform_indices = @transform_1, window_bounds = array<i64: 1, 128>}, {pipeline_mode = #tpu.pipeline_mode<synchronous>, transform_indices = @transform_2, window_bounds = array<i64: 128, 384>}, {pipeline_mode = #tpu.pipeline_mode<synchronous>, transform_indices = @transform_3, window_bounds = array<i64: 128, 384>}, {pipeline_mode = #tpu.pipeline_mode<synchronous>, transform_indices = @transform_4, window_bounds = array<i64: 2, 384>}, {pipeline_mode = #tpu.pipeline_mode<synchronous>, transform_indices = @transform_5, window_bounds = array<i64: 8, 128>}]} {
    %c2_i32 = arith.constant 2 : i32
    %c0_i32 = arith.constant 0 : i32
    %0 = arith.cmpi eq, %c2_i32, %c0_i32 : i32
    %c1_i32 = arith.constant 1 : i32
    %1 = arith.select %0, %c1_i32, %c2_i32 : i32
    %2 = arith.remsi %arg0, %1 : i32
    %c0_i32_0 = arith.constant 0 : i32
    %3 = arith.cmpi ne, %2, %c0_i32_0 : i32
    %c0_i32_1 = arith.constant 0 : i32
    %4 = arith.cmpi slt, %2, %c0_i32_1 : i32
    %c0_i32_2 = arith.constant 0 : i32
    %5 = arith.cmpi slt, %1, %c0_i32_2 : i32
    %6 = arith.xori %4, %5 : i1
    %7 = arith.andi %6, %3 : i1
    %8 = arith.addi %2, %1 : i32
    %9 = arith.select %7, %8, %2 : i32
    %c0_i32_3 = arith.constant 0 : i32
    %10 = arith.cmpi eq, %arg0, %c0_i32_3 : i32
    %11 = arith.extui %10 : i1 to i32
    %c0_i32_4 = arith.constant 0 : i32
    %12 = arith.cmpi ne, %11, %c0_i32_4 : i32
    scf.if %12 {
      %c0_28 = arith.constant 0 : index
      %c0_29 = arith.constant 0 : index
      %63 = vector.load %arg3[%c0_28, %c0_29] : memref<1x128xf32, #tpu.memory_space<vmem>>, vector<1x128xf32>
      %c0_30 = arith.constant 0 : index
      %c0_31 = arith.constant 0 : index
      %64 = vector.load %arg9[%c0_30, %c0_31] : memref<1x128xf32, #tpu.memory_space<vmem>>, vector<1x128xf32>
      tpu.vector_store %arg9[%c0_30, %c0_31], %63 {strides = array<i32>} : memref<1x128xf32, #tpu.memory_space<vmem>>, vector<1x128xf32>,
      %c0_32 = arith.constant 0 : index
      %65 = memref.load %arg1[%c0_32] : memref<8xi32, #tpu.memory_space<smem>>
      %c0_i32_33 = arith.constant 0 : i32
      %c0_i32_34 = arith.constant 0 : i32
      %c0_i32_35 = arith.constant 0 : i32
      %66 = tpu.memref_slice %arg2[%65, %c0_i32_35] : memref<16x128xf32, #tpu.memory_space<any>> -> memref<1x128xf32, #tpu.memory_space<any>>
      %c0_i32_36 = arith.constant 0 : i32
      %c0_i32_37 = arith.constant 0 : i32
      %67 = tpu.memref_slice %arg8[%c0_i32_33, %c0_i32_36, %c0_i32_37] : memref<2x1x128xf32, #tpu.memory_space<vmem>> -> memref<1x1x128xf32, #tpu.memory_space<vmem>>
      %68 = tpu.memref_squeeze %67 : memref<1x1x128xf32, #tpu.memory_space<vmem>> -> memref<1x128xf32, #tpu.memory_space<vmem>>
      %69 = tpu.memref_slice %arg10[%c0_i32_34] : memref<2x!tpu.dma_semaphore, #tpu.memory_space<semaphore_mem>> -> memref<1x!tpu.dma_semaphore, #tpu.memory_space<semaphore_mem>>
      %70 = tpu.memref_squeeze %69 : memref<1x!tpu.dma_semaphore, #tpu.memory_space<semaphore_mem>> -> memref<!tpu.dma_semaphore, #tpu.memory_space<semaphore_mem>>
      tpu.enqueue_dma source(%66 : memref<1x128xf32, #tpu.memory_space<any>>) target(%68 : memref<1x128xf32, #tpu.memory_space<vmem>>) target_semaphore(%70 : memref<!tpu.dma_semaphore, #tpu.memory_space<semaphore_mem>>)
    } else {
    }
    %c0_i32_5 = arith.constant 0 : i32
    %c0_i32_6 = arith.constant 0 : i32
    %13 = tpu.memref_slice %arg2[%c0_i32_5, %c0_i32_6] : memref<16x128xf32, #tpu.memory_space<any>> -> memref<1x128xf32, #tpu.memory_space<any>>
    %c0_i32_7 = arith.constant 0 : i32
    %c0_i32_8 = arith.constant 0 : i32
    %14 = tpu.memref_slice %arg8[%9, %c0_i32_7, %c0_i32_8] : memref<2x1x128xf32, #tpu.memory_space<vmem>> -> memref<1x1x128xf32, #tpu.memory_space<vmem>>
    %15 = tpu.memref_squeeze %14 : memref<1x1x128xf32, #tpu.memory_space<vmem>> -> memref<1x128xf32, #tpu.memory_space<vmem>>
    %16 = tpu.memref_slice %arg10[%9] : memref<2x!tpu.dma_semaphore, #tpu.memory_space<semaphore_mem>> -> memref<1x!tpu.dma_semaphore, #tpu.memory_space<semaphore_mem>>
    %17 = tpu.memref_squeeze %16 : memref<1x!tpu.dma_semaphore, #tpu.memory_space<semaphore_mem>> -> memref<!tpu.dma_semaphore, #tpu.memory_space<semaphore_mem>>
    tpu.wait_dma2 semaphore(%17 : memref<!tpu.dma_semaphore, #tpu.memory_space<semaphore_mem>>) src(%13 : memref<1x128xf32, #tpu.memory_space<any>>) dst(%15 : memref<1x128xf32, #tpu.memory_space<vmem>>)
    %c1_i32_9 = arith.constant 1 : i32
    %18 = arith.addi %arg0, %c1_i32_9 : i32
    %c8_i32 = arith.constant 8 : i32
    %19 = arith.cmpi slt, %18, %c8_i32 : i32
    %20 = arith.extui %19 : i1 to i32
    %c0_i32_10 = arith.constant 0 : i32
    %21 = arith.cmpi ne, %20, %c0_i32_10 : i32
    scf.if %21 {
      %c1_i32_28 = arith.constant 1 : i32
      %63 = arith.addi %arg0, %c1_i32_28 : i32
      %c1_i32_29 = arith.constant 1 : i32
      %64 = arith.subi %c1_i32_29, %9 : i32
      %65 = arith.index_cast %63 : i32 to index
      %66 = memref.load %arg1[%65] : memref<8xi32, #tpu.memory_space<smem>>
      %c0_i32_30 = arith.constant 0 : i32
      %67 = tpu.memref_slice %arg2[%66, %c0_i32_30] : memref<16x128xf32, #tpu.memory_space<any>> -> memref<1x128xf32, #tpu.memory_space<any>>
      %c0_i32_31 = arith.constant 0 : i32
      %c0_i32_32 = arith.constant 0 : i32
      %68 = tpu.memref_slice %arg8[%64, %c0_i32_31, %c0_i32_32] : memref<2x1x128xf32, #tpu.memory_space<vmem>> -> memref<1x1x128xf32, #tpu.memory_space<vmem>>
      %69 = tpu.memref_squeeze %68 : memref<1x1x128xf32, #tpu.memory_space<vmem>> -> memref<1x128xf32, #tpu.memory_space<vmem>>
      %70 = tpu.memref_slice %arg10[%64] : memref<2x!tpu.dma_semaphore, #tpu.memory_space<semaphore_mem>> -> memref<1x!tpu.dma_semaphore, #tpu.memory_space<semaphore_mem>>
      %71 = tpu.memref_squeeze %70 : memref<1x!tpu.dma_semaphore, #tpu.memory_space<semaphore_mem>> -> memref<!tpu.dma_semaphore, #tpu.memory_space<semaphore_mem>>
      tpu.enqueue_dma source(%67 : memref<1x128xf32, #tpu.memory_space<any>>) target(%69 : memref<1x128xf32, #tpu.memory_space<vmem>>) target_semaphore(%71 : memref<!tpu.dma_semaphore, #tpu.memory_space<semaphore_mem>>)
    } else {
    }
    %22 = arith.index_cast %9 : i32 to index
    %c0 = arith.constant 0 : index
    %c0_11 = arith.constant 0 : index
    %23 = vector.load %arg8[%22, %c0, %c0_11] : memref<2x1x128xf32, #tpu.memory_space<vmem>>, vector<1x1x128xf32>
    %24 = vector.shape_cast %23 : vector<1x1x128xf32> to vector<1x128xf32>
    %c0_12 = arith.constant 0 : index
    %c0_13 = arith.constant 0 : index
    %25 = vector.load %arg9[%c0_12, %c0_13] : memref<1x128xf32, #tpu.memory_space<vmem>>, vector<1x128xf32>
    %c0_14 = arith.constant 0 : index
    %c0_15 = arith.constant 0 : index
    %26 = vector.load %arg4[%c0_14, %c0_15] : memref<128x384xf32, #tpu.memory_space<vmem>>, vector<128x384xf32>
    %cst = arith.constant dense<0.000000e+00> : vector<1x384xf32>
    %27 = tpu.matmul %24, %26, %cst {dimension_numbers = #tpu.dot_dimension_numbers<[1], [0], [0], [1], [0, 0, 1, 1], [], []>} : vector<1x128xf32>, vector<128x384xf32>, vector<1x384xf32> -> vector<1x384xf32>
    %c0_16 = arith.constant 0 : index
    %c0_17 = arith.constant 0 : index
    %28 = vector.load %arg6[%c0_16, %c0_17] : memref<2x384xf32, #tpu.memory_space<vmem>>, vector<1x384xf32>
    %29 = arith.addf %27, %28 : vector<1x384xf32>
    %c0_18 = arith.constant 0 : index
    %c0_19 = arith.constant 0 : index
    %30 = vector.load %arg5[%c0_18, %c0_19] : memref<128x384xf32, #tpu.memory_space<vmem>>, vector<128x384xf32>
    %cst_20 = arith.constant dense<0.000000e+00> : vector<1x384xf32>
    %31 = tpu.matmul %25, %30, %cst_20 {dimension_numbers = #tpu.dot_dimension_numbers<[1], [0], [0], [1], [0, 0, 1, 1], [], []>} : vector<1x128xf32>, vector<128x384xf32>, vector<1x384xf32> -> vector<1x384xf32>
    %c1 = arith.constant 1 : index
    %c0_21 = arith.constant 0 : index
    %32 = vector.load %arg6[%c1, %c0_21] : memref<2x384xf32, #tpu.memory_space<vmem>>, vector<1x384xf32>
    %33 = arith.addf %31, %32 : vector<1x384xf32>
    %34 = vector.extract_strided_slice %29 {offsets = [0, 0], sizes = [1, 128], strides = [1, 1]} : vector<1x384xf32> to vector<1x128xf32>
    %35 = vector.extract_strided_slice %33 {offsets = [0, 0], sizes = [1, 128], strides = [1, 1]} : vector<1x384xf32> to vector<1x128xf32>
    %36 = arith.addf %34, %35 : vector<1x128xf32>
    %37 = arith.negf %36 : vector<1x128xf32>
    %38 = math.exp %37 : vector<1x128xf32>
    %cst_22 = arith.constant 1.000000e+00 : f32
    %39 = vector.broadcast %cst_22 : f32 to vector<1x128xf32>
    %40 = arith.addf %39, %38 : vector<1x128xf32>
    %41 = arith.divf %39, %40 : vector<1x128xf32>
    %42 = vector.extract_strided_slice %29 {offsets = [0, 128], sizes = [1, 128], strides = [1, 1]} : vector<1x384xf32> to vector<1x128xf32>
    %43 = vector.extract_strided_slice %33 {offsets = [0, 128], sizes = [1, 128], strides = [1, 1]} : vector<1x384xf32> to vector<1x128xf32>
    %44 = arith.addf %42, %43 : vector<1x128xf32>
    %45 = arith.negf %44 : vector<1x128xf32>
    %46 = math.exp %45 : vector<1x128xf32>
    %cst_23 = arith.constant 1.000000e+00 : f32
    %47 = vector.broadcast %cst_23 : f32 to vector<1x128xf32>
    %48 = arith.addf %47, %46 : vector<1x128xf32>
    %49 = arith.divf %47, %48 : vector<1x128xf32>
    %50 = vector.extract_strided_slice %29 {offsets = [0, 256], sizes = [1, 128], strides = [1, 1]} : vector<1x384xf32> to vector<1x128xf32>
    %51 = vector.extract_strided_slice %33 {offsets = [0, 256], sizes = [1, 128], strides = [1, 1]} : vector<1x384xf32> to vector<1x128xf32>
    %52 = arith.mulf %41, %51 : vector<1x128xf32>
    %53 = arith.addf %50, %52 : vector<1x128xf32>
    %54 = math.tanh %53 : vector<1x128xf32>
    %cst_24 = arith.constant 1.000000e+00 : f32
    %55 = vector.broadcast %cst_24 : f32 to vector<1x128xf32>
    %56 = arith.subf %55, %49 : vector<1x128xf32>
    %57 = arith.mulf %56, %54 : vector<1x128xf32>
    %58 = arith.mulf %49, %25 : vector<1x128xf32>
    %59 = arith.addf %57, %58 : vector<1x128xf32>
    %c0_25 = arith.constant 0 : index
    %c0_26 = arith.constant 0 : index
    %60 = vector.load %arg9[%c0_25, %c0_26] : memref<1x128xf32, #tpu.memory_space<vmem>>, vector<1x128xf32>
    tpu.vector_store %arg9[%c0_25, %c0_26], %59 {strides = array<i32>} : memref<1x128xf32, #tpu.memory_space<vmem>>, vector<1x128xf32>,
    %61 = arith.index_cast %arg0 : i32 to index
    %c0_27 = arith.constant 0 : index
    %62 = vector.load %arg7[%61, %c0_27] : memref<8x128xf32, #tpu.memory_space<vmem>>, vector<1x128xf32>
    tpu.vector_store %arg7[%61, %c0_27], %59 {strides = array<i32>} : memref<8x128xf32, #tpu.memory_space<vmem>>, vector<1x128xf32>,
    return
  }
  func.func @transform_1(%arg0: i32, %arg1: memref<8xi32, #tpu.memory_space<smem>>) -> (i32, i32) {
    %c0_i32 = arith.constant 0 : i32
    %c0_i32_0 = arith.constant 0 : i32
    %c0_i32_1 = arith.constant 0 : i32
    return %c0_i32, %c0_i32_0 : i32, i32
  }
  func.func @transform_2(%arg0: i32, %arg1: memref<8xi32, #tpu.memory_space<smem>>) -> (i32, i32) {
    %c0_i32 = arith.constant 0 : i32
    %c0_i32_0 = arith.constant 0 : i32
    %c0_i32_1 = arith.constant 0 : i32
    return %c0_i32, %c0_i32_0 : i32, i32
  }
  func.func @transform_3(%arg0: i32, %arg1: memref<8xi32, #tpu.memory_space<smem>>) -> (i32, i32) {
    %c0_i32 = arith.constant 0 : i32
    %c0_i32_0 = arith.constant 0 : i32
    %c0_i32_1 = arith.constant 0 : i32
    return %c0_i32, %c0_i32_0 : i32, i32
  }
  func.func @transform_4(%arg0: i32, %arg1: memref<8xi32, #tpu.memory_space<smem>>) -> (i32, i32) {
    %c0_i32 = arith.constant 0 : i32
    %c0_i32_0 = arith.constant 0 : i32
    %c0_i32_1 = arith.constant 0 : i32
    return %c0_i32, %c0_i32_0 : i32, i32
  }
  func.func @transform_5(%arg0: i32, %arg1: memref<8xi32, #tpu.memory_space<smem>>) -> (i32, i32) {
    %c0_i32 = arith.constant 0 : i32
    %c0_i32_0 = arith.constant 0 : i32
    %c0_i32_1 = arith.constant 0 : i32
    return %c0_i32, %c0_i32_0 : i32, i32
  }
}

</mosaic_0001>

<bundles_post_ra>
// kernel: tpu_custom_call.1
= control target key start
LH: loop header
LB: loop body
LE: loop exit
PB: predicated region body
PF: predicated region fallthrough
CT: control target
= control target key end

     0   :  { %s1505_s0 = inlined_call_operand.hbm [shape: s32[8], index: 0, kind: input, shape index: {}]   ;;  %s1506_s1 = inlined_call_operand.hbm [shape: f32[16,128], index: 1, kind: input, shape index: {}]   ;;  %s1507_s2 = inlined_call_operand.vmem [shape: f32[1,128], index: 2, kind: input, shape index: {}]   ;;  %s1508_s3 = inlined_call_operand.hbm [shape: f32[128,384], index: 3, kind: input, shape index: {}]   ;;  %s1509_s4 = inlined_call_operand.hbm [shape: f32[128,384], index: 4, kind: input, shape index: {}]   ;;  %s1510_s5 = inlined_call_operand.vmem [shape: f32[2,384], index: 5, kind: input, shape index: {}]   ;;  %s1511_s6 = inlined_call_operand.hbm [shape: f32[8,128], index: 6, kind: output, shape index: {}]  }
   0x1   :  { %s1083_s23 = scalar_lea.hbm %s1505_s0, 16 }
   0x2   :  { %p1084_p0 = scmp.ne.s32.totalorder %s1505_s0, %s1083_s23  ;;  %p1087_p1 = scmp.lt.u32.totalorder %s1083_s23, %s1505_s0 }
   0x4   :  { %p1089_p2 = pnand %p1087_p1, %p1084_p0 }
   0x6   :  { %1092 = shalt.err (!%p1089_p2)  }
   0x7   :  { %s1251_s28 = smov [#allocation6]  }
   0x8   :  { %12 = dma.hbm_to_smem %s1505_s0, 16, %s1251_s28, [#allocation5] }
   0x9   :  { %1231 = dma.done.wait [#allocation5], 16 }
   0xa   :  { %1232 = vsyncadd [#allocation5], 4294967280 }
   0xb   :  { %14 = sfence }
   0xc   :  { %15 = vsyncpa [#allocation8], 0 }
   0xd   :  { %16 = vsyncpa [#allocation11], 0 }
   0xe   :  { %17 = vsyncpa [#allocation9], 0  ;;  %s1309_s7 = smov 0  }
   0xf LB: > { %s1315_s8 = sadd.s32 4294967295, %s1249_s7   ;;  %p777_p3 = scmp.ge.s32.totalorder %s1249_s7, 1  ;;  %s1249_s7 = sphi %s1309_s7, %s23_s7  }
  0x10   : > { %p133_p4 = scmp.lt.s32.totalorder %s1249_s7, 9  ;;  %s1252_s0 = smov [#allocation7]  }
  0x11   : > { %s148_s9 = sshll.u32 %s1252_s0, 4  ;;  %p1512_p7 = scmp.eq.s32.totalorder %s1315_s8, 0  ;;  %s149_s9 = int_to_ptr.vmem [resolvable:$true] %s148_s9 }
  0x12   : > { %p1320_p6 = pnand %p777_p3, %p133_p4  ;;  %s1253_s11 = smov [#allocation10]  }
  0x13   : > { %s161_s12 = sshll.u32 %s1253_s11, 4  ;;  %s1093_s16 = scalar_lea.hbm %s1508_s3, 6144  ;;  %s1333_s12 = int_to_ptr.vmem [resolvable:$true] %s161_s12 }
  0x14   : > { %s1514_s10 = scalar_select %p1320_p6, 1, 0 }
  0x15   : > { %p1041_p8 = pneg %p1320_p6  ;;  %p1094_p10 = scmp.ne.s32.totalorder %s1508_s3, %s1093_s16 }
  0x16   : > { %p1100_p0 = scmp.lt.u32.totalorder %s1093_s16, %s1508_s3 }
  0x17   : > { %p1329_p9 = pnand %p1512_p7, %p1041_p8 }
  0x19   : > { %p1095_p11 = pneg %p1329_p9 }
  0x1b   : > { %p1096_p12 = pnand %p1095_p11, %p1094_p10 }
  0x1d   : > { %p1097_p13 = pneg %p1096_p12 }
  0x1f   : > { %p1102_p1 = pnand %p1100_p0, %p1097_p13 }
  0x21   : > { %1105 = shalt.err (!%p1102_p1)
}
  0x22   : > { %s1106_s21 = scalar_lea.vmem %s149_s9, 6144  ;;  %p1114_p8 = scmp.lt.s32.totalorder %s149_s9, %s149_s9 }
  0x23   : > { %p1107_p2 = scmp.ne.s32.totalorder %s149_s9, %s1106_s21  ;;  %p1115_p5 = scmp.lt.s32.totalorder %s1106_s21, %s1106_s21 }
  0x25   : > { %p1109_p3 = pnand %p1107_p2, %p1095_p11  ;;  %p1116_p7 = por %p1115_p5, %p1114_p8 }
  0x27   : > { %p1110_p4 = pneg %p1109_p3 }
  0x29   : > { %p1117_p6 = pnand %p1116_p7, %p1110_p4 }
  0x2b   : > { %1120 = shalt.err (!%p1117_p6)
}
  0x2c   : > { %s1254_s22 = smov 384   ;;  %s1255_s23 = smov 24  }
  0x2d   : > { %1044 = dma.hbm_to_vmem [thread:$0]  (!%p1329_p9), %s1508_s3, 6144, %s149_s9, [#allocation8], %s1254_s22, %s1254_s22, %s1255_s23  }
  0x2e   : > { %s1121_s28 = scalar_lea.hbm %s1509_s4, 6144 }
  0x2f   : > { %p1122_p10 = scmp.ne.s32.totalorder %s1509_s4, %s1121_s28  ;;  %p1128_p7 = scmp.lt.u32.totalorder %s1121_s28, %s1509_s4 }
  0x31   : > { %p1124_p5 = pnand %p1122_p10, %p1095_p11 }
  0x33   : > { %p1125_p6 = pneg %p1124_p5 }
  0x35   : > { %p1130_p12 = pnand %p1128_p7, %p1125_p6 }
  0x37   : > { %1133 = shalt.err (!%p1130_p12)
}
  0x38   : > { %s1134_s9 = scalar_lea.vmem %s1333_s12, 6144  ;;  %p1142_p2 = scmp.lt.s32.totalorder %s1333_s12, %s1333_s12 }
  0x39   : > { %p1135_p13 = scmp.ne.s32.totalorder %s1333_s12, %s1134_s9  ;;  %p1143_p3 = scmp.lt.s32.totalorder %s1134_s9, %s1134_s9 }
  0x3b   : > { %p1137_p0 = pnand %p1135_p13, %p1095_p11  ;;  %p1144_p4 = por %p1143_p3, %p1142_p2 }
  0x3d   : > { %p1138_p1 = pneg %p1137_p0 }
  0x3f   : > { %p1145_p8 = pnand %p1144_p4, %p1138_p1 }
  0x41   : > { %1148 = shalt.err (!%p1145_p8)
}
  0x42   : > { %1047 = dma.hbm_to_vmem [thread:$0]  (!%p1329_p9), %s1509_s4, 6144, %s1333_s12, [#allocation11], %s1254_s22, %s1254_s22, %s1255_s23  }
  0x43   : > { %p1516_p10 = scmp.ne.s32.totalorder %s1514_s10, 0 }
  0x44   : > { %p1517_p5 = scmp.eq.s32.totalorder (!%p1516_p10), %s1315_s8, 0 }
  0x45   : > { %180 = sbr.rel (%p1516_p10) target bundleno = 478 (0x1de), region = 36 }
  0x4c   : > { %1234 = dma.done.wait (%p1517_p5), [#allocation8], 6144   ;;  %p1518_p11 = pmov %p1517_p5 }
  0x4d   : > { %p1519_p6 = pmov %p1517_p5 }
  0x4e   : > { %1236 = vsyncadd (%p1518_p11), [#allocation8], 4294961152 }
  0x4f   : > { %1238 = dma.done.wait (%p1519_p6), [#allocation11], 6144   ;;  %p1520_p7 = pmov %p1517_p5 }
  0x50   : > { %p200_p12 = scmp.lt.s32.totalorder %s1315_s8, 0  ;;  %s201_s12 = ssub.s32 0, %s1315_s8 }
  0x51   : > { %1240 = vsyncadd (%p1520_p7), [#allocation11], 4294961152  ;;  %s783_s13 = smin.u32 %s1315_s8, %s201_s12  ;;  %p1521_p13 = scmp.ne.s32.totalorder %s1315_s8, 0 }
  0x52   : > { %s203_s10 = sand.u32 1, %s783_s13   ;;  %v216_v0 = vld [vmem:[%s1507_s2] sm:$0x1] (!%p1521_p13)  ;;  %s218_s20 = sld [smem:[#allocation6]] (!%p1521_p13) }
  0x53   : > { %s204_s16 = ssub.s32 0, %s203_s10  ;;  %215 = sbr.rel (%p1521_p13) target bundleno = 110 (0x6e), region = 48  ;;  %217 = vst [vmem:[#allocation3] sm:$0x1] (!%p1521_p13), %v216_v0 }
  0x54   : > { %s1524_s16 = smov (!%p200_p12, %s204_s16), %s203_s10  ;;  %s1256_s21 = smov (!%p1521_p13), [#allocation2]  }
  0x55   : > { %p785_p9 = scmp.lt.s32.totalorder %s1524_s16, 0  ;;  %s210_s17 = sadd.s32 2, %s1524_s16 }
  0x56   : > { %s228_s22 = sshll.u32 (!%p1521_p13), %s1256_s21, 4  ;;  %s1151_s30 = scalar_lea.hbm (!%p1521_p13), %s1506_s1, 256  ;;  %s229_s22 = int_to_ptr.vmem [resolvable:$true] %s228_s22 }
  0x57   : > { %s1526_s17 = smov (!%p785_p9, %s210_s17), %s1524_s16 }
  0x58   : > { %s787_s23 = sshll.u32 (!%p1521_p13), %s218_s20, 4 }
  0x59   : > { %s220_s26 = scalar_lea.hbm (!%p1521_p13), %s1506_s1, %s787_s23 }
  0x5a   : > { %s1149_s27 = scalar_lea.hbm %s220_s26, 16  ;;  %p1152_p1 = scmp.lt.u32.totalorder %s220_s26, %s1506_s1 }
  0x5b   : > { %p1150_p0 = scmp.ne.s32.totalorder %s220_s26, %s1149_s27  ;;  %p1153_p2 = scmp.lt.u32.totalorder %s1151_s30, %s1149_s27 }
  0x5c   : > { %p1155_p4 = scmp.lt.u32.totalorder %s1149_s27, %s220_s26 }
  0x5d   : > { %p1154_p3 = por %p1153_p2, %p1152_p1 }
  0x5f   : > { %p1156_p8 = por %p1155_p4, %p1154_p3 }
  0x61   : > { %p1157_p10 = pnand %p1156_p8, %p1150_p0 }
  0x63   : > { %1160 = shalt.err (!%p1157_p10)  }
  0x64   : > { %s1161_s9 = scalar_lea.vmem %s229_s22, 16  ;;  %s1165_s14 = scalar_lea.vmem %s229_s22, 32 }
  0x65   : > { %p1162_p5 = scmp.ne.s32.totalorder %s229_s22, %s1161_s9  ;;  %p1166_p11 = scmp.lt.s32.totalorder %s229_s22, %s229_s22 }
  0x66   : > { %p1167_p6 = scmp.lt.s32.totalorder %s1165_s14, %s1161_s9 }
  0x68   : > { %p1168_p7 = por %p1167_p6, %p1166_p11 }
  0x6a   : > { %p1169_p12 = pnand %p1168_p7, %p1162_p5 }
  0x6c   : > { %1172 = shalt.err (!%p1169_p12)  }
  0x6d   : > { %231 = dma.hbm_to_vmem [thread:$0]  %s220_s26, 16, %s229_s22, [#allocation4] }
  0x6e PF: > { %s232_s15 = scalar_lea.vmem [#allocation2], %s1526_s17  ;;  %s233_s12 = scalar_lea.sflag [#allocation4], %s1526_s17 }
  0x6f   : > { %1241 = dma.done.wait %s233_s12, 16 }
  0x70   : > { %1242 = vsyncadd %s233_s12, 4294967280  ;;  %s237_s13 = sadd.s32 1, %s1315_s8  ;;  %v1257_v1 = vmov 0.0|0.0   ;;  %v1258_v2 = vmov 0.0   ;;  %s242_s16 = ssub.s32 1, %s1526_s17  ;;  %vm1259_vm0 = vmmov 0  }
  0x71   : > { %p1414_p9 = scmp.lt.s32.totalorder %s237_s13, 8  ;;  %939 = vmatprep.subr.bf16.mxu1 %v1257_v1  ;;  %390 = vmatprep.mubr.f32.mxu0 %v1258_v2  ;;  %v262_v3 = vld [vmem:[#allocation7 + $0x8] sm:$0xff]  ;;  %v265_v4 = vld [vmem:[#allocation7 + $0x20] sm:$0xff]  ;;  %v264_v7 = vld [vmem:[#allocation7 + $0x18] sm:$0xff]  ;;  %s246_s20 = scalar_lea.vmem [#allocation2], %s242_s16 }
  0x72   : > { %869 = vmatprep.mubr.msk.f32.mxu1 %vm1259_vm0, %v1258_v2  ;;  %v261_v5 = vld [vmem:[#allocation7] sm:$0xff]  ;;  %v907_v6 = vpack.c.bf16 %v265_v4, %v262_v3  ;;  %v268_v8 = vld [vmem:[#allocation7 + $0x38] sm:$0xff]  ;;  %v271_v9 = vld [vmem:[#allocation7 + $0x50] sm:$0xff]  ;;  %s255_s21 = sshll.u32 %s246_s20, 4  ;;  %s247_s26 = scalar_lea.sflag [#allocation4], %s242_s16  ;;  %s1429_s21 = int_to_ptr.vmem [resolvable:$true] %s255_s21 }
  0x73   : > { %s1034_s18 = scalar_select %p1414_p9, [#allocation6], [#allocation19]  ;;  %v909_v10 = vpack.c.bf16 %v264_v7, %v261_v5  ;;  %v911_v11 = vpack.c.bf16 %v271_v9, %v268_v8  ;;  %v267_v12 = vld [vmem:[#allocation7 + $0x30] sm:$0xff]  ;;  %v270_v13 = vld [vmem:[#allocation7 + $0x48] sm:$0xff]  ;;  %v277_v15 = vld [vmem:[#allocation7 + $0x80] sm:$0xff] }
  0x74   : > { %s1528_s13 = smov (!%p1414_p9, %s237_s13), 0  ;;  %v274_v14 = vld [vmem:[#allocation7 + $0x68] sm:$0xff]  ;;  %908 = vmatprep.subr.bf16.mxu0 %v907_v6  ;;  %v913_v16 = vpack.c.bf16 %v270_v13, %v267_v12  ;;  %v273_v18 = vld [vmem:[#allocation7 + $0x60] sm:$0xff]  ;;  %v276_v19 = vld [vmem:[#allocation7 + $0x78] sm:$0xff]  ;;  %s1177_s30 = scalar_lea.hbm %s1506_s1, 256 }
  0x75   : > { %s243_s19 = sld [smem:[%s1034_s18 + %s1528_s13]]  ;;  %910 = vmatpush1.bf16.msra.mxu0 %v909_v10  ;;  %v915_v17 = vpack.c.bf16 %v277_v15, %v274_v14  ;;  %v280_v20 = vld [vmem:[#allocation7 + $0x98] sm:$0xff]  ;;  %v283_v21 = vld [vmem:[#allocation7 + $0xb0] sm:$0xff] }
  0x76   : > { %912 = vmatprep.subr.bf16.mxu0 %v911_v11 }
  0x7b   : > { %s789_s22 = sshll.u32 %s243_s19, 4 }
  0x7c   : > { %s245_s25 = scalar_lea.hbm %s1506_s1, %s789_s22 }
  0x7d   : > { %s1173_s27 = scalar_lea.hbm %s245_s25, 16  ;;  %p1178_p2 = scmp.lt.u32.totalorder %s245_s25, %s1506_s1 }
  0x7e   : > { %p1174_p13 = scmp.ne.s32.totalorder %s245_s25, %s1173_s27  ;;  %p1179_p3 = scmp.lt.u32.totalorder %s1177_s30, %s1173_s27 }
  0x7f   : > { %p1181_p8 = scmp.lt.u32.totalorder %s1173_s27, %s245_s25 }
  0x80   : > { %p1175_p0 = pnand %p1174_p13, %p1414_p9  ;;  %p1180_p4 = por %p1179_p3, %p1178_p2 }
  0x82   : > { %p1176_p1 = pneg %p1175_p0  ;;  %p1182_p10 = por %p1181_p8, %p1180_p4 }
  0x84   : > { %p1183_p5 = pnand %p1182_p10, %p1176_p1 }
  0x86   : > { %1186 = shalt.err (!%p1183_p5)  }
  0x87   : > { %s1187_s9 = scalar_lea.vmem %s1429_s21, 16  ;;  %s1260_s14 = smov [#allocation2]  }
  0x88   : > { %p1188_p11 = scmp.ne.s32.totalorder %s1429_s21, %s1187_s9  ;;  %s1191_s12 = sshll.u32 %s1260_s14, 4  ;;  %s1192_s12 = int_to_ptr.vmem [resolvable:$false] %s1191_s12 }
  0x89   : > { %s1193_s13 = scalar_lea.vmem %s1192_s12, 32  ;;  %p1194_p12 = scmp.lt.s32.totalorder %s1429_s21, %s1192_s12 }
  0x8a   : > { %p1189_p6 = pnand %p1188_p11, %p1414_p9  ;;  %p1195_p13 = scmp.lt.s32.totalorder %s1193_s13, %s1187_s9 }
  0x8c   : > { %p1190_p7 = pneg %p1189_p6  ;;  %p1196_p0 = por %p1195_p13, %p1194_p12 }
  0x8e   : > { %p1197_p2 = pnand %p1196_p0, %p1190_p7 }
  0x90   : > { %1200 = shalt.err (!%p1197_p2)  }
  0x91   : > { %1036 = dma.hbm_to_vmem [thread:$0]  (%p1414_p9), %s245_s25, 16, %s1429_s21, %s247_s26  ;;  %914 = vmatpush1.bf16.msra.mxu0 %v913_v16  ;;  %v917_v22 = vpack.c.bf16 %v276_v19, %v273_v18  ;;  %v279_v23 = vld [vmem:[#allocation7 + $0x90] sm:$0xff]  ;;  %v919_v24 = vpack.c.bf16 %v283_v21, %v280_v20  ;;  %v282_v25 = vld [vmem:[#allocation7 + $0xa8] sm:$0xff]  ;;  %v289_v29 = vld [vmem:[#allocation7 + $0xe0] sm:$0xff] }
  0x92   : > { %916 = vmatprep.subr.bf16.mxu0 %v915_v17  ;;  %v263_v26 = vld [vmem:[#allocation7 + $0x10] sm:$0xff]  ;;  %v266_v27 = vld [vmem:[#allocation7 + $0x28] sm:$0xff]  ;;  %v269_v31 = vld [vmem:[#allocation7 + $0x40] sm:$0xff]  ;;  %v921_v33 = vpack.c.bf16 %v282_v25, %v279_v23  ;;  %s1261_s18 = smov [#allocation12]   ;;  %p1053_p9 = scmp.eq.s32.totalorder %s1315_s8, 7 }
  0x93   : > { %v286_v28 = vld [vmem:[#allocation7 + $0xc8] sm:$0xff]  ;;  %v940_v30 = vpack.c.bf16 %v266_v27, %v263_v26  ;;  %v272_v32 = vld [vmem:[#allocation7 + $0x58] sm:$0xff]  ;;  %v285_v34 = vld [vmem:[#allocation7 + $0xc0] sm:$0xff]  ;;  %s705_s19 = sshll.u32 %s1261_s18, 4  ;;  %s800_s20 = scalar_lea.vmem [#allocation12], %s1249_s7  ;;  %s706_s19 = int_to_ptr.vmem [resolvable:$true] %s705_s19 }
  0x94   : > { %v943_v35 = vpack.c.bf16 %v272_v32, %v269_v31  ;;  %v923_v36 = vpack.c.bf16 %v289_v29, %v286_v28  ;;  %v288_v37 = vld [vmem:[#allocation7 + $0xd8] sm:$0xff]  ;;  %v275_v38 = vld [vmem:[#allocation7 + $0x70] sm:$0xff]  ;;  %v278_v39 = vld [vmem:[#allocation7 + $0x88] sm:$0xff]  ;;  %s1201_s21 = scalar_lea.vmem %s706_s19, 128  ;;  %p1208_p8 = scmp.lt.s32.totalorder %s706_s19, %s706_s19 }
  0x95   : > { %918 = vmatpush1.bf16.msra.mxu0 %v917_v22  ;;  %941 = vmatpush3.bf16.msra.mxu1 %v940_v30  ;;  %v292_v40 = vld [vmem:[#allocation7 + $0xf8] sm:$0xff]  ;;  %v295_v41 = vld [vmem:[#allocation7 + $0x110] sm:$0xff]  ;;  %v925_v42 = vpack.c.bf16 %v288_v37, %v285_v34  ;;  %v946_v44 = vpack.c.bf16 %v278_v39, %v275_v38  ;;  %v294_v46 = vld [vmem:[#allocation7 + $0x108] sm:$0xff]  ;;  %p1202_p1 = scmp.ne.s32.totalorder %s706_s19, %s1201_s21  ;;  %p1209_p10 = scmp.lt.s32.totalorder %s1201_s21, %s1201_s21 }
  0x96   : > { %920 = vmatprep.subr.bf16.mxu0 %v919_v24  ;;  %942 = vmatprep.subr.bf16.mxu1 %v1257_v1  ;;  %v291_v43 = vld [vmem:[#allocation7 + $0xf0] sm:$0xff]  ;;  %v927_v45 = vpack.c.bf16 %v295_v41, %v292_v40  ;;  %v281_v47 = vld [vmem:[#allocation7 + $0xa0] sm:$0xff]  ;;  %v284_v48 = vld [vmem:[#allocation7 + $0xb8] sm:$0xff] }
  0x97   : > { %v298_v49 = vld [vmem:[#allocation7 + $0x128] sm:$0xff]  ;;  %v301_v50 = vld [vmem:[#allocation7 + $0x140] sm:$0xff]  ;;  %v929_v51 = vpack.c.bf16 %v294_v46, %v291_v43  ;;  %v949_v53 = vpack.c.bf16 %v284_v48, %v281_v47  ;;  %v300_v55 = vld [vmem:[#allocation7 + $0x138] sm:$0xff]  ;;  %p1203_p3 = pnand %p1202_p1, %p1053_p9  ;;  %p1210_p5 = por %p1209_p10, %p1208_p8 }
  0x98   : > { %v297_v52 = vld [vmem:[#allocation7 + $0x120] sm:$0xff]  ;;  %v931_v54 = vpack.c.bf16 %v301_v50, %v298_v49  ;;  %v287_v56 = vld [vmem:[#allocation7 + $0xd0] sm:$0xff]  ;;  %v290_v57 = vld [vmem:[#allocation7 + $0xe8] sm:$0xff] }
  0x99   : > { %922 = vmatpush1.bf16.msra.mxu0 %v921_v33  ;;  %944 = vmatpush3.bf16.msra.mxu1 %v943_v35  ;;  %v304_v58 = vld [vmem:[#allocation7 + $0x158] sm:$0xff]  ;;  %v307_v59 = vld [vmem:[#allocation7 + $0x170] sm:$0xff]  ;;  %v933_v60 = vpack.c.bf16 %v300_v55, %v297_v52  ;;  %v952_v62 = vpack.c.bf16 %v290_v57, %v287_v56  ;;  %v306_v0 = vld [vmem:[#allocation7 + $0x168] sm:$0xff]  ;;  %p1204_p4 = pneg %p1203_p3 }
  0x9a   : > { %924 = vmatprep.subr.bf16.mxu0 %v923_v36  ;;  %945 = vmatprep.subr.bf16.mxu1 %v1257_v1  ;;  %v303_v61 = vld [vmem:[#allocation7 + $0x150] sm:$0xff]  ;;  %v935_v63 = vpack.c.bf16 %v307_v59, %v304_v58  ;;  %v293_v3 = vld [vmem:[#allocation7 + $0x100] sm:$0xff]  ;;  %v296_v4 = vld [vmem:[#allocation7 + $0x118] sm:$0xff] }
  0x9b   : > { %v468_v5 = vld [vmem:[#allocation10 + $0x8] sm:$0xff]  ;;  %v471_v6 = vld [vmem:[#allocation10 + $0x20] sm:$0xff]  ;;  %v937_v7 = vpack.c.bf16 %v306_v0, %v303_v61  ;;  %v955_v9 = vpack.c.bf16 %v296_v4, %v293_v3  ;;  %v470_v11 = vld [vmem:[#allocation10 + $0x18] sm:$0xff]  ;;  %p1211_p11 = pnand %p1210_p5, %p1204_p4 }
  0x9c   : > { %v467_v8 = vld [vmem:[#allocation10] sm:$0xff]  ;;  %v963_v10 = vpack.c.bf16 %v471_v6, %v468_v5  ;;  %v299_v12 = vld [vmem:[#allocation7 + $0x130] sm:$0xff]  ;;  %v302_v13 = vld [vmem:[#allocation7 + $0x148] sm:$0xff] }
  0x9d   : > { %926 = vmatpush1.bf16.msra.mxu0 %v925_v42  ;;  %947 = vmatpush3.bf16.msra.mxu1 %v946_v44  ;;  %v474_v14 = vld [vmem:[#allocation10 + $0x38] sm:$0xff]  ;;  %v477_v15 = vld [vmem:[#allocation10 + $0x50] sm:$0xff]  ;;  %v965_v17 = vpack.c.bf16 %v470_v11, %v467_v8  ;;  %v958_v19 = vpack.c.bf16 %v302_v13, %v299_v12  ;;  %v476_v21 = vld [vmem:[#allocation10 + $0x48] sm:$0xff] }
  0x9e   : > { %928 = vmatprep.subr.bf16.mxu0 %v927_v45  ;;  %948 = vmatprep.subr.bf16.mxu1 %v1257_v1  ;;  %v259_v16 = vld [vmem:[%s232_s15] sm:$0x1]  ;;  %v967_v20 = vpack.c.bf16 %v477_v15, %v474_v14  ;;  %v305_v22 = vld [vmem:[#allocation7 + $0x160] sm:$0xff]  ;;  %v308_v23 = vld [vmem:[#allocation7 + $0x178] sm:$0xff] }
  0x9f   : > { %v473_v18 = vld [vmem:[#allocation10 + $0x30] sm:$0xff]  ;;  %v480_v24 = vld [vmem:[#allocation10 + $0x68] sm:$0xff]  ;;  %v483_v25 = vld [vmem:[#allocation10 + $0x80] sm:$0xff]  ;;  %v961_v28 = vpack.c.bf16 %v308_v23, %v305_v22 }
  0xa0   : > { %v969_v26 = vpack.c.bf16 %v476_v21, %v473_v18  ;;  %v479_v27 = vld [vmem:[#allocation10 + $0x60] sm:$0xff]  ;;  %v971_v29 = vpack.c.bf16 %v483_v25, %v480_v24  ;;  %v482_v30 = vld [vmem:[#allocation10 + $0x78] sm:$0xff]  ;;  %v469_v31 = vld [vmem:[#allocation10 + $0x10] sm:$0xff] }
  0xa1   : > { %930 = vmatpush1.bf16.msra.mxu0 %v929_v51  ;;  %950 = vmatpush3.bf16.msra.mxu1 %v949_v53  ;;  %v472_v32 = vld [vmem:[#allocation10 + $0x28] sm:$0xff]  ;;  %v486_v33 = vld [vmem:[#allocation10 + $0x98] sm:$0xff]  ;;  %v489_v34 = vld [vmem:[#allocation10 + $0xb0] sm:$0xff]  ;;  %v973_v35 = vpack.c.bf16 %v482_v30, %v479_v27 }
  0xa2   : > { %932 = vmatprep.subr.bf16.mxu0 %v931_v54  ;;  %951 = vmatprep.subr.bf16.mxu1 %v1257_v1  ;;  %v485_v36 = vld [vmem:[#allocation10 + $0x90] sm:$0xff]  ;;  %v996_v37 = vpack.c.bf16 %v472_v32, %v469_v31  ;;  %v975_v38 = vpack.c.bf16 %v489_v34, %v486_v33  ;;  %v488_v39 = vld [vmem:[#allocation10 + $0xa8] sm:$0xff]  ;;  %v475_v40 = vld [vmem:[#allocation10 + $0x40] sm:$0xff] }
  0xa3   : > { %v478_v41 = vld [vmem:[#allocation10 + $0x58] sm:$0xff]  ;;  %v492_v42 = vld [vmem:[#allocation10 + $0xc8] sm:$0xff]  ;;  %v495_v43 = vld [vmem:[#allocation10 + $0xe0] sm:$0xff]  ;;  %v977_v44 = vpack.c.bf16 %v488_v39, %v485_v36 }
  0xa4   : > { %v491_v45 = vld [vmem:[#allocation10 + $0xc0] sm:$0xff]  ;;  %v999_v46 = vpack.c.bf16 %v478_v41, %v475_v40  ;;  %v979_v47 = vpack.c.bf16 %v495_v43, %v492_v42  ;;  %v494_v48 = vld [vmem:[#allocation10 + $0xd8] sm:$0xff]  ;;  %v481_v49 = vld [vmem:[#allocation10 + $0x70] sm:$0xff] }
  0xa5   : > { %934 = vmatpush1.bf16.msra.mxu0 %v933_v60  ;;  %953 = vmatpush3.bf16.msra.mxu1 %v952_v62  ;;  %v484_v50 = vld [vmem:[#allocation10 + $0x88] sm:$0xff]  ;;  %v498_v51 = vld [vmem:[#allocation10 + $0xf8] sm:$0xff]  ;;  %v501_v52 = vld [vmem:[#allocation10 + $0x110] sm:$0xff]  ;;  %v981_v53 = vpack.c.bf16 %v494_v48, %v491_v45 }
  0xa6   : > { %936 = vmatprep.subr.bf16.mxu0 %v935_v63  ;;  %954 = vmatprep.subr.bf16.mxu1 %v1257_v1  ;;  %v497_v54 = vld [vmem:[#allocation10 + $0xf0] sm:$0xff]  ;;  %v1002_v55 = vpack.c.bf16 %v484_v50, %v481_v49  ;;  %v983_v56 = vpack.c.bf16 %v501_v52, %v498_v51  ;;  %v500_v57 = vld [vmem:[#allocation10 + $0x108] sm:$0xff]  ;;  %v487_v58 = vld [vmem:[#allocation10 + $0xa0] sm:$0xff] }
  0xa7   : > { %v490_v59 = vld [vmem:[#allocation10 + $0xb8] sm:$0xff]  ;;  %v504_v60 = vld [vmem:[#allocation10 + $0x128] sm:$0xff]  ;;  %v507_v61 = vld [vmem:[#allocation10 + $0x140] sm:$0xff]  ;;  %v985_v62 = vpack.c.bf16 %v500_v57, %v497_v54 }
  0xa8   : > { %v503_v63 = vld [vmem:[#allocation10 + $0x120] sm:$0xff]  ;;  %v1005_v0 = vpack.c.bf16 %v490_v59, %v487_v58  ;;  %v506_v3 = vld [vmem:[#allocation10 + $0x138] sm:$0xff]  ;;  %v493_v4 = vld [vmem:[#allocation10 + $0xd0] sm:$0xff] }
  0xa9   : > { %938 = vmatpush1.bf16.msra.mxu0 %v937_v7  ;;  %956 = vmatpush3.bf16.msra.mxu1 %v955_v9  ;;  %v496_v5 = vld [vmem:[#allocation10 + $0xe8] sm:$0xff]  ;;  %v510_v6 = vld [vmem:[#allocation10 + $0x158] sm:$0xff]  ;;  %v513_v7 = vld [vmem:[#allocation10 + $0x170] sm:$0xff]  ;;  %v989_v8 = vpack.c.bf16 %v506_v3, %v503_v63 }
  0xaa   : > { %964 = vmatprep.subr.bf16.mxu0 %v963_v10  ;;  %957 = vmatprep.subr.bf16.mxu1 %v1257_v1  ;;  %v509_v9 = vld [vmem:[#allocation10 + $0x150] sm:$0xff]  ;;  %v1008_v10 = vpack.c.bf16 %v496_v5, %v493_v4  ;;  %v991_v11 = vpack.c.bf16 %v513_v7, %v510_v6  ;;  %v512_v12 = vld [vmem:[#allocation10 + $0x168] sm:$0xff]  ;;  %v499_v13 = vld [vmem:[#allocation10 + $0x100] sm:$0xff] }
  0xab   : > { %v502_v14 = vld [vmem:[#allocation10 + $0x118] sm:$0xff]  ;;  %v993_v15 = vpack.c.bf16 %v512_v12, %v509_v9  ;;  %v508_v18 = vld [vmem:[#allocation10 + $0x148] sm:$0xff]  ;;  %v511_v21 = vld [vmem:[#allocation10 + $0x160] sm:$0xff] }
  0xac   : > { %391 = vmatmul.mubr.f32.vlgmr.msra.gmra.mrb[0].mxu0 %v259_v16  ;;  %v514_v22 = vld [vmem:[#allocation10 + $0x178] sm:$0xff] }
  0xad   : > { %966 = vmatpush1.bf16.msra.mxu0 %v965_v17  ;;  %959 = vmatpush3.bf16.msra.mxu1 %v958_v19  ;;  %v505_v17 = vld [vmem:[#allocation10 + $0x130] sm:$0xff]  ;;  %v260_v19 = vld [vmem:[#allocation3] sm:$0x1]  ;;  %v1017_v23 = vpack.c.bf16 %v514_v22, %v511_v21 }
  0xae   : > { %968 = vmatprep.subr.bf16.mxu0 %v967_v20  ;;  %960 = vmatprep.subr.bf16.mxu1 %v1257_v1  ;;  %v1014_v20 = vpack.c.bf16 %v508_v18, %v505_v17  ;;  %v309_v30 = vld [vmem:[%s1510_s5] ss:$2 sm:$0x7] }
  0xaf   : > { %597 = vmatprep.mubr.f32.mxu0 %v1258_v2 }
  0xb1   : > { %970 = vmatpush1.bf16.msra.mxu0 %v969_v26  ;;  %962 = vmatpush3.bf16.msra.mxu1 %v961_v28  ;;  %v311_v26 = vlaneseq }
  0xb2   : > { %972 = vmatprep.subr.bf16.mxu0 %v971_v29  ;;  %995 = vmatprep.subr.bf16.mxu1 %v1257_v1  ;;  %v790_v29 = vld [vmem:[%s1510_s5 + $0x1] ss:$2 sm:$0x7] }
  0xb3   : > { %v312_v27 = vshrl.u32 %v311_v26, 7 }
  0xb4   : > { %870 = vmatmul.mubr.f32.vlgmr.msra.gmra.mrb[0].mxu1 %v259_v16  ;;  %v1011_v16 = vpack.c.bf16 %v502_v14, %v499_v13 }
  0xb5   : > { %974 = vmatpush1.bf16.msra.mxu0 %v973_v35  ;;  %997 = vmatpush3.bf16.msra.mxu1 %v996_v37  ;;  %v313_v28 = vsub.s32 0, %v312_v27  ;;  %v317_v31 = vsub.s32 1, %v312_v27 }
  0xb6   : > { %976 = vmatprep.subr.bf16.mxu0 %v975_v38  ;;  %998 = vmatprep.subr.bf16.mxu1 %v1257_v1 }
  0xb7   : > { %904 = vmatprep.mubr.msk.f32.mxu1 %vm1259_vm0, %v1258_v2  ;;  %v987_v2 = vpack.c.bf16 %v507_v61, %v504_v60  ;;  %v314_v32 = vrot.slane %v309_v30, %v313_v28  ;;  %v521_v33 = vrot.slane %v790_v29, %v313_v28  ;;  %v318_v34 = vrot.slane %v309_v30, %v317_v31 }
  0xb9   : > { %978 = vmatpush1.bf16.msra.mxu0 %v977_v44  ;;  %1000 = vmatpush3.bf16.msra.mxu1 %v999_v46  ;;  %v1019_v35 = vadd.f32 %v521_v33, %v314_v32 }
  0xba   : > { %980 = vmatprep.subr.bf16.mxu0 %v979_v47  ;;  %1001 = vmatprep.subr.bf16.mxu1 %v1257_v1  ;;  %v321_v47 = vsub.s32 2, %v312_v27 }
  0xbc   : > { %v529_v48 = vrot.slane %v790_v29, %v321_v47  ;;  %v322_v50 = vrot.slane %v309_v30, %v321_v47 }
  0xbd   : > { %982 = vmatpush1.bf16.msra.mxu0 %v981_v53  ;;  %1003 = vmatpush3.bf16.msra.mxu1 %v1002_v55 }
  0xbe   : > { %984 = vmatprep.subr.bf16.mxu0 %v983_v56  ;;  %1004 = vmatprep.subr.bf16.mxu1 %v1257_v1 }
  0xc1   : > { %986 = vmatpush1.bf16.msra.mxu0 %v985_v62  ;;  %1006 = vmatpush3.bf16.msra.mxu1 %v1005_v0 }
  0xc2   : > { %988 = vmatprep.subr.bf16.mxu0 %v987_v2  ;;  %1007 = vmatprep.subr.bf16.mxu1 %v1257_v1 }
  0xc5   : > { %990 = vmatpush1.bf16.msra.mxu0 %v989_v8  ;;  %1009 = vmatpush3.bf16.msra.mxu1 %v1008_v10 }
  0xc6   : > { %992 = vmatprep.subr.bf16.mxu0 %v991_v11  ;;  %1010 = vmatprep.subr.bf16.mxu1 %v1257_v1 }
  0xc9   : > { %994 = vmatpush1.bf16.msra.mxu0 %v993_v15  ;;  %1012 = vmatpush3.bf16.msra.mxu1 %v1011_v16 }
  0xca   : > { %1013 = vmatprep.subr.bf16.mxu1 %v1257_v1 }
  0xcc   : > { %598 = vmatmul.mubr.f32.vlgmr.msra.gmra.mrb[0].mxu0 %v260_v19 }
  0xcd   : > { %1015 = vmatpush3.bf16.msra.mxu1 %v1014_v20 }
  0xce   : > { %1016 = vmatprep.subr.bf16.mxu1 %v1257_v1  ;;  %v525_v1 = vrot.slane %v790_v29, %v317_v31 }
  0xd0   : > { %v1021_v37 = vadd.f32 %v525_v1, %v318_v34 }
  0xd1   : > { %1018 = vmatpush3.bf16.msra.mxu1 %v1017_v23 }
  0xd4   : > { %905 = vmatmul.mubr.f32.vlgmr.msra.gmra.mrb[2].mxu1 %v260_v19 }
 0x187   : > { %v463_v24 = vpop.f32.mrb[0].mxu1 }
 0x188   : > { %v871_v25 = vpop.f32.mrb[1].mxu1  ;;  %v464_v54 = vadd.f32 %v463_v24, %v322_v50 }
 0x19f   : > { %v599_v36 = vpop.f32.mrb[0].mxu0 }
 0x1a0   : > { %v1020_v38 = vadd.f32 %v1019_v35, %v599_v36  ;;  %v601_v39 = vpop.f32.mrb[1].mxu0 }
 0x1a1   : > { %v1022_v41 = vadd.f32 %v1021_v37, %v601_v39 }
 0x1a2   : > { %v791_v40 = vmul.f32 -1.442695, %v1020_v38 }
 0x1a3   : > { %v792_v42 = vmul.f32 -1.442695, %v1022_v41 }
 0x1a4   : > { %1073 = vpow2.f32 %v791_v40 }
 0x1a5   : > { %1075 = vpow2.f32 %v792_v42 }
 0x1a7   : > { %v670_v43 = vpop.f32.mrb[2].mxu1 }
 0x1a8   : > { %v906_v44 = vpop.f32.mrb[3].mxu1  ;;  %v671_v52 = vadd.f32 %v670_v43, %v529_v48 }
 0x1ae   : > { %v1074_v45 = vpop.eup %1073 }
 0x1af   : > { %v678_v46 = vadd.f32 1.0, %v1074_v45  ;;  %v1076_v49 = vpop.eup %1075 }
 0x1b0   : > { %v685_v51 = vadd.f32 1.0, %v1076_v49 }
 0x1b1   : > { %1077 = vrcp.f32 %v678_v46 }
 0x1b2   : > { %1079 = vrcp.f32 %v685_v51 }
 0x1bb   : > { %v1078_v53 = vpop.eup %1077 }
 0x1bc   : > { %v688_v55 = vmul.f32 %v1078_v53, %v671_v52  ;;  %v1080_v57 = vpop.eup %1079 }
 0x1bd   : > { %v691_v58 = vsub.f32 1.0, %v1080_v57  ;;  %v693_v61 = vmul.f32 %v1080_v57, %v260_v19 }
 0x1be   : > { %v689_v56 = vadd.f32 %v688_v55, %v464_v54 }
 0x1c0   : > { %1081 = vtanh.f32 %v689_v56 }
 0x1ca   : > { %v1082_v59 = vpop.eup %1081 }
 0x1cb   : > { %v692_v60 = vmul.f32 %v1082_v59, %v691_v58 }
 0x1cd   : > { %v694_v62 = vadd.f32 %v693_v61, %v692_v60 }
 0x1cf   : > { %695 = vst [vmem:[#allocation3] sm:$0x1] %v694_v62  ;;  %802 = vst [vmem:[%s800_s20 - $0x1] sm:$0x1] %v694_v62 }
 0x1d0   : > { %1214 = shalt.err (!%p1211_p11)
}
 0x1d1   : > { %s1215_s24 = scalar_lea.hbm %s1511_s6, 128 }
 0x1d2   : > { %p1216_p6 = scmp.ne.s32.totalorder %s1511_s6, %s1215_s24  ;;  %p1221_p13 = scmp.lt.u32.totalorder %s1215_s24, %s1511_s6 }
 0x1d4   : > { %p1217_p7 = pnand %p1216_p6, %p1053_p9 }
 0x1d6   : > { %p1218_p12 = pneg %p1217_p7 }
 0x1d8   : > { %p1223_p0 = pnand %p1221_p13, %p1218_p12 }
 0x1da   : > { %1226 = shalt.err (!%p1223_p0)
}
 0x1db   : > { %1038 = dma.vmem_to_hbm [thread:$0]  (%p1053_p9), %s706_s19, 128, %s1511_s6, [#allocation9]  }
 0x1dc   : > { %1244 = dma.done.wait (%p1053_p9), [#allocation9], 128  }
 0x1dd   : > { %1246 = vsyncadd (%p1053_p9), [#allocation9], 4294967168 }
 0x1de PF: > { %s23_s7 = sadd.s32 1, %s1249_s7  }
 0x1df   : > { %p20_p2 = scmp.ge.s32.totalorder %s23_s7, 10  }
 0x1e1   :  { %22 = sbr.rel (!%p20_p2) target bundleno = 15 (0xf), region = 94 }
 0x1e8   :  { %718 = vsyncpa [#allocation8], 1 }
 0x1e9   :  { %720 = vsyncpa [#allocation8 + $0x1], 1 }
 0x1ea   :  { %721 = vsyncpa [#allocation11], 1 }
 0x1eb   :  { %722 = vsyncpa [#allocation9], 1 }
 0x1ec   :  { %724 = vsyncpa [#allocation9 + $0x1], 1 }
 0x1ed   :  { %725 = vsyncmov [#allocation4] }
 0x1f0   :  { %s726_s0 = vpop.sfrf %725 }
 0x1f1   :  { %p798_p1 = scmp.ne.s32.totalorder %s726_s0, 0 }
 0x1f3   :  { %730 = shalt.err (%p798_p1)  }
 0x1f4   :  { %732 = vsyncmov [#allocation4 + $0x1] }
 0x1f7   :  { %s733_s11 = vpop.sfrf %732 }
 0x1f8   :  { %p799_p3 = scmp.ne.s32.totalorder %s733_s11, 0 }
 0x1fa   :  { %737 = shalt.err (%p799_p3)  }

</bundles_post_ra>
